<compile_context>
chip_gen: v7x
topology: tpu7x:2x2x1
jax: 0.10.0
libtpu: 0.0.40
codegen_flags: <defaults>
</compile_context>

<pallas_src>
import functools

import jax
import jax.numpy as jnp
from jax.experimental import pallas as pl
from jax.experimental.pallas import tpu as pltpu

HIDDEN1 = 128       # fc1 output width
HIDDEN2 = 32        # fc2 output width (lane-padded to 128 inside the kernel)
HIDDEN2_PAD = 128
OUT = 2             # fc3 output width (written narrow, no lane padding)
MAX_TILE_N = 8192   # row tile; large DMAs + amortized per-step overhead


def _round_up(x, m):
    return (x + m - 1) // m * m


def mlp_b_kernel(x_ref, w1_ref, b1_ref, w2_ref, b2_ref, w3_ref, b3_ref, o_ref):
    # x arrives as f32 straight from HBM; cast to the MXU compute dtype here
    # (rides the otherwise-idle VPU; avoids a separate wrapper cast/pad pass).
    x = x_ref[...].astype(w1_ref.dtype)

    # fc1 + ReLU: [tile, dim_in] @ [dim_in, 128], f32 accumulation.
    h1 = jnp.dot(x, w1_ref[...], preferred_element_type=jnp.float32)
    h1 = jnp.maximum(h1 + b1_ref[...], 0.0)

    # fc2 + ReLU (zero-padded to 128 cols -> lane-dense h2, K=128 for fc3).
    h2 = jnp.dot(h1.astype(w2_ref.dtype), w2_ref[...],
                 preferred_element_type=jnp.float32)
    h2 = jnp.maximum(h2 + b2_ref[...], 0.0)

    # fc3 (no activation); zero-padded w3 rows contribute exact zeros.
    h3 = jnp.dot(h2.astype(w3_ref.dtype), w3_ref[...],
                 preferred_element_type=jnp.float32)
    o_ref[...] = (h3 + b3_ref[...]).astype(o_ref.dtype)


@functools.partial(jax.jit, static_argnames=("compute_dtype", "tile_n"))
def mlp_b_forward(x, params, *, compute_dtype=jnp.bfloat16, tile_n=MAX_TILE_N):
    """x: any shape whose elements flatten to [-1, dim_in] (x.view(-1, dim_in))."""
    w1, b1, w2, b2, w3, b3 = params
    dim_in = w1.shape[0]
    x2d = x.reshape(-1, dim_in)      # stays f32; ingested directly by the kernel
    n = x2d.shape[0]

    # ---- fc2 zero-padded to 128 output cols; fc3 K padded to match ----
    w2p = jnp.zeros((HIDDEN1, HIDDEN2_PAD), w2.dtype).at[:, :HIDDEN2].set(w2)
    b2p = jnp.zeros((1, HIDDEN2_PAD), b2.dtype).at[:, :HIDDEN2].set(b2)
    w3p = jnp.zeros((HIDDEN2_PAD, OUT), w3.dtype).at[:HIDDEN2, :].set(w3)

    # ---- only the (tiny) weights are cast in the wrapper; x is cast in-kernel ----
    w1c = w1.astype(compute_dtype)
    w2c = w2p.astype(compute_dtype)
    w3c = w3p.astype(compute_dtype)

    # ---- row tile: multiple of 16 (bf16 sublane packing); aim for >= 2 grid
    # steps so ("parallel",) can shard row tiles across both v7x TCs ----
    tile = min(tile_n, max(16, _round_up(pl.cdiv(n, 2), 16)))
    if tile > n:
        # tiny batches: single full-array row block (block dim == full dim is legal)
        tile = n
    grid = (pl.cdiv(n, tile),)       # ragged last block handled by Pallas masking

    const = lambda i: (0, 0)         # weights/biases: VMEM-resident across steps

    out = pl.pallas_call(
        mlp_b_kernel,
        out_shape=jax.ShapeDtypeStruct((n, OUT), jnp.float32),
        grid=grid,
        in_specs=[
            pl.BlockSpec((tile, dim_in), lambda i: (i, 0)),   # x row tile (f32)
            pl.BlockSpec((dim_in, HIDDEN1), const),           # w1
            pl.BlockSpec((1, HIDDEN1), const),                # b1
            pl.BlockSpec((HIDDEN1, HIDDEN2_PAD), const),      # w2 (col-padded)
            pl.BlockSpec((1, HIDDEN2_PAD), const),            # b2 (col-padded)
            pl.BlockSpec((HIDDEN2_PAD, OUT), const),          # w3 (row-padded K)
            pl.BlockSpec((1, OUT), const),                    # b3
        ],
        # Narrow (tile, 2) output block: last dim equals the full array dim,
        # writeback stays a dense contiguous DMA; no pad slab, no wrapper slice.
        out_specs=pl.BlockSpec((tile, OUT), lambda i: (i, 0)),
        compiler_params=pltpu.CompilerParams(
            dimension_semantics=("parallel",),   # shard row tiles across TCs
            vmem_limit_bytes=48 * 1024 * 1024,   # headroom for 8192-row tiles
        ),
    )(x2d, w1c, b1, w2c, b2p, w3c, b3)

    return out


def init_params(key, dim_in):
    """Deterministic init mimicking nn.Linear's U(-1/sqrt(fan_in), 1/sqrt(fan_in)).
    Weights are stored as [in, out] (transposed vs. PyTorch's [out, in])."""
    ks = jax.random.split(key, 6)

    def linear(kw, kb, fan_in, fan_out):
        bound = 1.0 / jnp.sqrt(jnp.float32(fan_in))
        w = jax.random.uniform(kw, (fan_in, fan_out), jnp.float32, -bound, bound)
        b = jax.random.uniform(kb, (1, fan_out), jnp.float32, -bound, bound)
        return w, b

    w1, b1 = linear(ks[0], ks[1], dim_in, HIDDEN1)
    w2, b2 = linear(ks[2], ks[3], HIDDEN1, HIDDEN2)
    w3, b3 = linear(ks[4], ks[5], HIDDEN2, OUT)
    return (w1, b1, w2, b2, w3, b3)


if __name__ == "__main__":
    key = jax.random.PRNGKey(0)
    k_x, k_p = jax.random.split(key)

    dim_in = 64
    params = init_params(k_p, dim_in)
    w1, b1, w2, b2, w3, b3 = params

    def ref_f32(xr):
        h = jnp.maximum(xr @ w1 + b1, 0.0)
        h = jnp.maximum(h @ w2 + b2, 0.0)
        return h @ w3 + b3

    def ref_bf16(xr):
        bf = jnp.bfloat16
        h = jnp.maximum(jnp.dot(xr.astype(bf), w1.astype(bf),
                                preferred_element_type=jnp.float32) + b1, 0.0)
        h = jnp.maximum(jnp.dot(h.astype(bf), w2.astype(bf),
                                preferred_element_type=jnp.float32) + b2, 0.0)
        return jnp.dot(h.astype(bf), w3.astype(bf),
                       preferred_element_type=jnp.float32) + b3

    # 1) 3-D input, 8 rows: exercises x.view(-1, dim_in) and the tiny-batch path.
    x = jax.random.normal(k_x, (4, 2, dim_in), jnp.float32)
    out = jax.block_until_ready(mlp_b_forward(x, params))
    assert out.shape == (8, 2)
    xr = x.reshape(-1, dim_in)
    assert jnp.allclose(out, ref_bf16(xr), atol=1e-2, rtol=1e-2)
    assert jnp.allclose(out, ref_f32(xr), atol=5e-2, rtol=5e-2)

    # 2) 32 rows -> two 16-row grid steps (multi-step pipeline / dual-TC sizing).
    x_mid = jax.random.normal(k_x, (32, dim_in), jnp.float32)
    out_mid = jax.block_until_ready(mlp_b_forward(x_mid, params))
    assert out_mid.shape == (32, 2)
    assert jnp.allclose(out_mid, ref_bf16(x_mid), atol=1e-2, rtol=1e-2)

    # 3) odd row count (37) -> ragged last block; bf16 and exact-f32 compute paths.
    x_big = jax.random.normal(k_x, (37, dim_in), jnp.float32)
    out_odd = jax.block_until_ready(mlp_b_forward(x_big, params))
    assert out_odd.shape == (37, 2)
    assert jnp.allclose(out_odd, ref_bf16(x_big), atol=1e-2, rtol=1e-2)

    out_f32 = jax.block_until_ready(
        mlp_b_forward(x_big, params, compute_dtype=jnp.float32))
    assert out_f32.shape == (37, 2)
    assert jnp.allclose(out_f32, ref_f32(x_big), atol=1e-4, rtol=1e-4)

    print("KERNEL_OK")
</pallas_src>

<mosaic_0001>
module attributes {stable_mosaic.version = 11 : i64} {
  func.func @mlp_b_kernel(%arg0: i32, %arg1: memref<8x64xf32, #tpu.memory_space<vmem>>, %arg2: memref<64x128xbf16, #tpu.memory_space<vmem>>, %arg3: memref<1x128xf32, #tpu.memory_space<vmem>>, %arg4: memref<128x128xbf16, #tpu.memory_space<vmem>>, %arg5: memref<1x128xf32, #tpu.memory_space<vmem>>, %arg6: memref<128x2xbf16, #tpu.memory_space<vmem>>, %arg7: memref<1x2xf32, #tpu.memory_space<vmem>>, %arg8: memref<8x2xf32, #tpu.memory_space<vmem>>) attributes {dimension_semantics = [#tpu.dimension_semantics<parallel>], iteration_bounds = array<i64: 1>, scalar_prefetch = 0 : i64, scratch_operands = 0 : i64, tpu.core_type = #tpu.core_type<tc>, window_params = [{transform_indices = @transform_0, window_bounds = array<i64: 8, 64>}, {pipeline_mode = #tpu.pipeline_mode<synchronous>, transform_indices = @transform_1, window_bounds = array<i64: 64, 128>}, {pipeline_mode = #tpu.pipeline_mode<synchronous>, transform_indices = @transform_2, window_bounds = array<i64: 1, 128>}, {pipeline_mode = #tpu.pipeline_mode<synchronous>, transform_indices = @transform_3, window_bounds = array<i64: 128, 128>}, {pipeline_mode = #tpu.pipeline_mode<synchronous>, transform_indices = @transform_4, window_bounds = array<i64: 1, 128>}, {pipeline_mode = #tpu.pipeline_mode<synchronous>, transform_indices = @transform_5, window_bounds = array<i64: 128, 2>}, {pipeline_mode = #tpu.pipeline_mode<synchronous>, transform_indices = @transform_6, window_bounds = array<i64: 1, 2>}, {transform_indices = @transform_7, window_bounds = array<i64: 8, 2>}]} {
    %c0 = arith.constant 0 : index
    %c0_0 = arith.constant 0 : index
    %0 = vector.load %arg1[%c0, %c0_0] : memref<8x64xf32, #tpu.memory_space<vmem>>, vector<8x64xf32>
    %1 = arith.truncf %0 : vector<8x64xf32> to vector<8x64xbf16>
    %c0_1 = arith.constant 0 : index
    %c0_2 = arith.constant 0 : index
    %2 = vector.load %arg2[%c0_1, %c0_2] : memref<64x128xbf16, #tpu.memory_space<vmem>>, vector<64x128xbf16>
    %cst = arith.constant dense<0.000000e+00> : vector<8x128xf32>
    %3 = tpu.matmul %1, %2, %cst {dimension_numbers = #tpu.dot_dimension_numbers<[1], [0], [0], [1], [0, 0, 1, 1], [], []>} : vector<8x64xbf16>, vector<64x128xbf16>, vector<8x128xf32> -> vector<8x128xf32>
    %c0_3 = arith.constant 0 : index
    %c0_4 = arith.constant 0 : index
    %4 = vector.load %arg3[%c0_3, %c0_4] : memref<1x128xf32, #tpu.memory_space<vmem>>, vector<1x128xf32>
    %5 = vector.broadcast %4 : vector<1x128xf32> to vector<8x128xf32>
    %6 = arith.addf %3, %5 : vector<8x128xf32>
    %cst_5 = arith.constant 0.000000e+00 : f32
    %7 = vector.broadcast %cst_5 : f32 to vector<8x128xf32>
    %8 = arith.maximumf %6, %7 : vector<8x128xf32>
    %9 = arith.truncf %8 : vector<8x128xf32> to vector<8x128xbf16>
    %c0_6 = arith.constant 0 : index
    %c0_7 = arith.constant 0 : index
    %10 = vector.load %arg4[%c0_6, %c0_7] : memref<128x128xbf16, #tpu.memory_space<vmem>>, vector<128x128xbf16>
    %cst_8 = arith.constant dense<0.000000e+00> : vector<8x128xf32>
    %11 = tpu.matmul %9, %10, %cst_8 {dimension_numbers = #tpu.dot_dimension_numbers<[1], [0], [0], [1], [0, 0, 1, 1], [], []>} : vector<8x128xbf16>, vector<128x128xbf16>, vector<8x128xf32> -> vector<8x128xf32>
    %c0_9 = arith.constant 0 : index
    %c0_10 = arith.constant 0 : index
    %12 = vector.load %arg5[%c0_9, %c0_10] : memref<1x128xf32, #tpu.memory_space<vmem>>, vector<1x128xf32>
    %13 = vector.broadcast %12 : vector<1x128xf32> to vector<8x128xf32>
    %14 = arith.addf %11, %13 : vector<8x128xf32>
    %cst_11 = arith.constant 0.000000e+00 : f32
    %15 = vector.broadcast %cst_11 : f32 to vector<8x128xf32>
    %16 = arith.maximumf %14, %15 : vector<8x128xf32>
    %17 = arith.truncf %16 : vector<8x128xf32> to vector<8x128xbf16>
    %c0_12 = arith.constant 0 : index
    %c0_13 = arith.constant 0 : index
    %18 = vector.load %arg6[%c0_12, %c0_13] : memref<128x2xbf16, #tpu.memory_space<vmem>>, vector<128x2xbf16>
    %cst_14 = arith.constant dense<0.000000e+00> : vector<8x2xf32>
    %19 = tpu.matmul %17, %18, %cst_14 {dimension_numbers = #tpu.dot_dimension_numbers<[1], [0], [0], [1], [0, 0, 1, 1], [], []>} : vector<8x128xbf16>, vector<128x2xbf16>, vector<8x2xf32> -> vector<8x2xf32>
    %c0_15 = arith.constant 0 : index
    %c0_16 = arith.constant 0 : index
    %20 = vector.load %arg7[%c0_15, %c0_16] : memref<1x2xf32, #tpu.memory_space<vmem>>, vector<1x2xf32>
    %21 = vector.broadcast %20 : vector<1x2xf32> to vector<8x2xf32>
    %22 = arith.addf %19, %21 : vector<8x2xf32>
    %c0_17 = arith.constant 0 : index
    %c0_18 = arith.constant 0 : index
    %23 = vector.load %arg8[%c0_17, %c0_18] : memref<8x2xf32, #tpu.memory_space<vmem>>, vector<8x2xf32>
    tpu.vector_store %arg8[%c0_17, %c0_18], %22 {strides = array<i32>} : memref<8x2xf32, #tpu.memory_space<vmem>>, vector<8x2xf32>,
    return
  }
  func.func @transform_0(%arg0: i32) -> (i32, i32) {
    %c0_i32 = arith.constant 0 : i32
    %c0_i32_0 = arith.constant 0 : i32
    return %arg0, %c0_i32 : i32, i32
  }
  func.func @transform_1(%arg0: i32) -> (i32, i32) {
    %c0_i32 = arith.constant 0 : i32
    %c0_i32_0 = arith.constant 0 : i32
    %c0_i32_1 = arith.constant 0 : i32
    return %c0_i32, %c0_i32_0 : i32, i32
  }
  func.func @transform_2(%arg0: i32) -> (i32, i32) {
    %c0_i32 = arith.constant 0 : i32
    %c0_i32_0 = arith.constant 0 : i32
    %c0_i32_1 = arith.constant 0 : i32
    return %c0_i32, %c0_i32_0 : i32, i32
  }
  func.func @transform_3(%arg0: i32) -> (i32, i32) {
    %c0_i32 = arith.constant 0 : i32
    %c0_i32_0 = arith.constant 0 : i32
    %c0_i32_1 = arith.constant 0 : i32
    return %c0_i32, %c0_i32_0 : i32, i32
  }
  func.func @transform_4(%arg0: i32) -> (i32, i32) {
    %c0_i32 = arith.constant 0 : i32
    %c0_i32_0 = arith.constant 0 : i32
    %c0_i32_1 = arith.constant 0 : i32
    return %c0_i32, %c0_i32_0 : i32, i32
  }
  func.func @transform_5(%arg0: i32) -> (i32, i32) {
    %c0_i32 = arith.constant 0 : i32
    %c0_i32_0 = arith.constant 0 : i32
    %c0_i32_1 = arith.constant 0 : i32
    return %c0_i32, %c0_i32_0 : i32, i32
  }
  func.func @transform_6(%arg0: i32) -> (i32, i32) {
    %c0_i32 = arith.constant 0 : i32
    %c0_i32_0 = arith.constant 0 : i32
    %c0_i32_1 = arith.constant 0 : i32
    return %c0_i32, %c0_i32_0 : i32, i32
  }
  func.func @transform_7(%arg0: i32) -> (i32, i32) {
    %c0_i32 = arith.constant 0 : i32
    %c0_i32_0 = arith.constant 0 : i32
    return %arg0, %c0_i32 : i32, i32
  }
}

</mosaic_0001>

<bundles_post_ra>
// kernel: mlp_b_forward.1
= control target key start
LH: loop header
LB: loop body
LE: loop exit
PB: predicated region body
PF: predicated region fallthrough
CT: control target
= control target key end

     0   :  { %v465_v0 = vmov 0.0   ;;  %vm466_vm0 = vmmov 0   ;;  %vm68_vm1 = vcmask 523264   ;;  %vm338_vm2 = vcmask 15360   ;;  %s608_s1 = inlined_call_operand.vmem [shape: bf16[64,128], index: 1, kind: input, shape index: {}]   ;;  %s609_s3 = inlined_call_operand.vmem [shape: bf16[128,128], index: 3, kind: input, shape index: {}]   ;;  %s610_s0 = inlined_call_operand.vmem [shape: f32[8,64], index: 0, kind: input, shape index: {}]   ;;  %s611_s5 = inlined_call_operand.vmem [shape: bf16[128,2], index: 5, kind: input, shape index: {}]   ;;  %s612_s2 = inlined_call_operand.vmem [shape: f32[1,128], index: 2, kind: input, shape index: {}]   ;;  %s613_s4 = inlined_call_operand.vmem [shape: f32[1,128], index: 4, kind: input, shape index: {}]   ;;  %s614_s6 = inlined_call_operand.vmem [shape: f32[1,2], index: 6, kind: input, shape index: {}]   ;;  %s615_s7 = inlined_call_operand.vmem [shape: f32[8,2], index: 7, kind: output, shape index: {}]  }
   0x1   :  { %391 = vmatprep.subr.bf16.mxu0 %v465_v0  ;;  %v445_v1 = vld [vmem:[%s608_s1] sm:$0xff]   ;;  %399 = vmatprep.mubr.msk.bf16.mxu0 %vm466_vm0, %v465_v0  ;;  %v446_v2 = vld [vmem:[%s608_s1 + $0x8] sm:$0xff]   ;;  %v447_v4 = vld [vmem:[%s608_s1 + $0x10] sm:$0xff]  }
   0x2   :  { %403 = vmatprep.subr.bf16.mxu1 %v465_v0  ;;  %419 = vmatprep.mubr.msk.bf16.mxu1 %vm466_vm0, %v465_v0  ;;  %v449_v3 = vld [vmem:[%s609_s3] sm:$0xff]   ;;  %v450_v5 = vld [vmem:[%s609_s3 + $0x8] sm:$0xff]   ;;  %v448_v6 = vld [vmem:[%s608_s1 + $0x18] sm:$0xff]  }
   0x3   :  { %392 = vmatpush3.bf16.msra.mxu0 %v445_v1  ;;  %404 = vmatpush3.bf16.msra.mxu1 %v449_v3  ;;  %v27_v7 = vld [vmem:[%s610_s0] sm:$0xff]  ;;  %v451_v8 = vld [vmem:[%s609_s3 + $0x10] sm:$0xff]   ;;  %v452_v10 = vld [vmem:[%s609_s3 + $0x18] sm:$0xff]  }
   0x4   :  { %393 = vmatprep.subr.bf16.mxu0 %v465_v0  ;;  %405 = vmatprep.subr.bf16.mxu1 %v465_v0  ;;  %v28_v9 = vpack.c.bf16 %v27_v7, %v27_v7  ;;  %v453_v11 = vld [vmem:[%s609_s3 + $0x20] sm:$0xff]   ;;  %v454_v12 = vld [vmem:[%s609_s3 + $0x28] sm:$0xff]   ;;  %v455_v13 = vld [vmem:[%s609_s3 + $0x30] sm:$0xff]  }
   0x5   :  { %v456_v14 = vld [vmem:[%s609_s3 + $0x38] sm:$0xff]   ;;  %v457_v15 = vld [vmem:[%s611_s5] sm:$0xff]   ;;  %v458_v16 = vld [vmem:[%s611_s5 + $0x8] sm:$0xff]  }
   0x6   :  { %v459_v17 = vld [vmem:[%s611_s5 + $0x10] sm:$0xff]   ;;  %v460_v18 = vld [vmem:[%s611_s5 + $0x18] sm:$0xff]   ;;  %v461_v19 = vld [vmem:[%s611_s5 + $0x20] sm:$0xff]  }
   0x7   :  { %394 = vmatpush3.bf16.msra.mxu0 %v446_v2  ;;  %406 = vmatpush3.bf16.msra.mxu1 %v450_v5  ;;  %v462_v20 = vld [vmem:[%s611_s5 + $0x28] sm:$0xff]   ;;  %v344_v21 = vld [vmem:[%s612_s2] ss:$0 sm:$0xff]  ;;  %v463_v29 = vld [vmem:[%s611_s5 + $0x30] sm:$0xff]  }
   0x8   :  { %395 = vmatprep.subr.bf16.mxu0 %v465_v0  ;;  %407 = vmatprep.subr.bf16.mxu1 %v465_v0  ;;  %v464_v30 = vld [vmem:[%s611_s5 + $0x38] sm:$0xff]   ;;  %v350_v31 = vld [vmem:[%s613_s4] ss:$0 sm:$0xff] }
   0x9   :  { %v359_v39 = vld [vmem:[%s614_s6] ss:$0 sm:$0xff] }
   0xb   :  { %396 = vmatpush3.bf16.msra.mxu0 %v447_v4  ;;  %408 = vmatpush3.bf16.msra.mxu1 %v451_v8 }
   0xc   :  { %397 = vmatprep.subr.bf16.mxu0 %v465_v0  ;;  %409 = vmatprep.subr.bf16.mxu1 %v465_v0 }
   0xf   :  { %398 = vmatpush3.bf16.msra.mxu0 %v448_v6  ;;  %410 = vmatpush3.bf16.msra.mxu1 %v452_v10 }
  0x10   :  { %423 = vmatprep.subr.bf16.mxu0 %v465_v0  ;;  %411 = vmatprep.subr.bf16.mxu1 %v465_v0 }
  0x12   :  { %400 = vmatmul.mubr.msk.bf16.vlgmr.msra.gmra.mrb[0].mxu0 %vm68_vm1, %v28_v9 }
  0x13   :  { %439 = vmatprep.mubr.msk.bf16.mxu0 %vm466_vm0, %v465_v0  ;;  %412 = vmatpush3.bf16.msra.mxu1 %v453_v11 }
  0x14   :  { %413 = vmatprep.subr.bf16.mxu1 %v465_v0  ;;  %424 = vmatpush3.bf16.msra.mxu0 %v457_v15 }
  0x15   :  { %425 = vmatprep.subr.bf16.mxu0 %v465_v0 }
  0x17   :  { %414 = vmatpush3.bf16.msra.mxu1 %v454_v12 }
  0x18   :  { %415 = vmatprep.subr.bf16.mxu1 %v465_v0  ;;  %426 = vmatpush3.bf16.msra.mxu0 %v458_v16 }
  0x19   :  { %427 = vmatprep.subr.bf16.mxu0 %v465_v0 }
  0x1b   :  { %416 = vmatpush3.bf16.msra.mxu1 %v455_v13 }
  0x1c   :  { %417 = vmatprep.subr.bf16.mxu1 %v465_v0  ;;  %428 = vmatpush3.bf16.msra.mxu0 %v459_v17 }
  0x1d   :  { %429 = vmatprep.subr.bf16.mxu0 %v465_v0 }
  0x1f   :  { %418 = vmatpush3.bf16.msra.mxu1 %v456_v14 }
  0x20   :  { %430 = vmatpush3.bf16.msra.mxu0 %v460_v18 }
  0x21   :  { %431 = vmatprep.subr.bf16.mxu0 %v465_v0 }
  0x24   :  { %432 = vmatpush3.bf16.msra.mxu0 %v461_v19 }
  0x25   :  { %433 = vmatprep.subr.bf16.mxu0 %v465_v0 }
  0x28   :  { %434 = vmatpush3.bf16.msra.mxu0 %v462_v20 }
  0x29   :  { %435 = vmatprep.subr.bf16.mxu0 %v465_v0 }
  0x2c   :  { %436 = vmatpush3.bf16.msra.mxu0 %v463_v29 }
  0x2d   :  { %437 = vmatprep.subr.bf16.mxu0 %v465_v0 }
  0x30   :  { %438 = vmatpush3.bf16.msra.mxu0 %v464_v30 }
  0xe5   :  { %v106_v22 = vpop.f32.mrb[0].mxu0 }
  0xe6   :  { %v107_v23 = vadd.f32 %v344_v21, %v106_v22  ;;  %v401_v24 = vpop.f32.mrb[1].mxu0 }
  0xe7   :  { %v109_v25 = vpop.f32.mrb[2].mxu0 }
  0xe8   :  { %v112_v26 = vmax.f32 %v107_v23, 0.0  ;;  %v402_v27 = vpop.f32.mrb[3].mxu0 }
  0xea   :  { %v113_v28 = vpack.c.bf16 %v112_v26, %v112_v26 }
  0xec   :  { %420 = vmatmul.mubr.bf16.vlgmr.msra.gmra.mrb[0].mxu1 %v113_v28 }
 0x1bf   :  { %v219_v32 = vpop.f32.mrb[0].mxu1 }
 0x1c0   :  { %v220_v33 = vadd.f32 %v350_v31, %v219_v32  ;;  %v421_v34 = vpop.f32.mrb[1].mxu1 }
 0x1c1   :  { %v222_v35 = vpop.f32.mrb[2].mxu1 }
 0x1c2   :  { %v225_v36 = vmax.f32 %v220_v33, 0.0  ;;  %v422_v37 = vpop.f32.mrb[3].mxu1 }
 0x1c4   :  { %v226_v38 = vpack.c.bf16 %v225_v36, %v225_v36 }
 0x1c6   :  { %440 = vmatmul.mubr.bf16.vlgmr.msra.gmra.mrb[4].mxu0 %v226_v38 }
 0x299   :  { %v332_v40 = vpop.f32.mrb[4].mxu0 }
 0x29a   :  { %v333_v41 = vadd.f32 %v359_v39, %v332_v40  ;;  %v441_v42 = vpop.f32.mrb[5].mxu0 }
 0x29b   :  { %v335_v43 = vpop.f32.mrb[6].mxu0 }
 0x29c   :  { %339 = vst.msk [vmem:[%s615_s7] sm:$0xff] %vm338_vm2, %v333_v41  ;;  %v442_v44 = vpop.f32.mrb[7].mxu0 }

</bundles_post_ra>
